<compile_context>
chip_gen: v6e
topology: v6e:2x2x1
jax: 0.10.0
libtpu: 0.0.40
codegen_flags: <defaults>
</compile_context>

<pallas_src>
import functools
import math

import jax
import jax.numpy as jnp
from jax.experimental import pallas as pl
from jax.experimental.pallas import tpu as pltpu

LANES = 128


def _cdiv(a, b):
    return -(-a // b)


def _round_up(x, m):
    return ((x + m - 1) // m) * m


def _sublane_multiple(dtype):
    itemsize = jnp.dtype(dtype).itemsize
    return {4: 8, 2: 16, 1: 32}.get(itemsize, 8)


def _tpu_generation():
    """Best-effort device-kind sniffing; unknown kinds get conservative defaults."""
    try:
        kind = (getattr(jax.devices()[0], "device_kind", "") or "").lower()
    except Exception:
        kind = ""
    if "v7" in kind or "tpu7" in kind:
        return "v7x"
    if "v6" in kind:
        return "v6e"
    if "v5" in kind and ("lite" in kind or "5e" in kind):
        return "v5e"
    return "other"


def _masked_l1_kernel(pred_ref, tgt_ref, sum_ref, cnt_ref, acc_sum, acc_cnt,
                      *, rows_total, steps, tile_rows, acc_rows):
    c = pl.program_id(0)
    i = pl.program_id(1)

    # Reset the wide accumulators at the start of every chunk.
    @pl.when(i == 0)
    def _():
        acc_sum[...] = jnp.zeros_like(acc_sum)
        acc_cnt[...] = jnp.zeros_like(acc_cnt)

    # Cast per-tile in VMEM (inputs stay in their native dtype in HBM).
    t = tgt_ref[...].astype(jnp.float32)
    p = pred_ref[...].astype(jnp.float32)

    def accumulate(valid_f):
        abs_diff = jnp.abs(t - p) * valid_f
        # Fold the (tile_rows, 128) tile into (acc_rows, 128) accumulators with
        # pure elementwise vreg adds; acc_rows/8 independent chains expose ILP.
        acc_sum[...] += abs_diff.reshape(-1, acc_rows, LANES).sum(axis=0)
        acc_cnt[...] += valid_f.reshape(-1, acc_rows, LANES).sum(axis=0)

    # Un-clamped logical block id (int32; fine for any realistic input size).
    block_id = c * steps + i
    # Interior fast path: block entirely covered by real rows -> no index mask.
    is_interior = (block_id + 1) * tile_rows <= rows_total

    @pl.when(is_interior)
    def _():
        accumulate((t > 0.0).astype(jnp.float32))

    @pl.when(jnp.logical_not(is_interior))
    def _():
        # Boundary block (partial last tile) or clamped duplicate block: rows
        # beyond the real data hold undefined padded/duplicated values, so mask
        # them with a single row-iota compare.
        rows_rem = rows_total - block_id * tile_rows
        row_ids = jax.lax.broadcasted_iota(jnp.int32, (tile_rows, LANES), 0)
        valid = jnp.logical_and(t > 0.0, row_ids < rows_rem)
        accumulate(valid.astype(jnp.float32))

    # Single cross-lane reduce + SMEM write per chunk.
    @pl.when(i == pl.num_programs(1) - 1)
    def _():
        sum_ref[0, 0] = jnp.sum(acc_sum[...])
        cnt_ref[0, 0] = jnp.sum(acc_cnt[...])


def masked_l1_loss(pred, target, *, max_tile_rows=None, num_chunks=None):
    """Mean of |target - pred| over elements where target > 0.

    max_tile_rows / num_chunks are optional overrides (used for testing the
    multi-tile / multi-chunk / boundary paths on small inputs).
    """
    assert pred.ndim == target.ndim, "inconsistent dimensions"
    assert pred.shape == target.shape

    n = math.prod(pred.shape)
    p = jnp.ravel(pred)      # free reshape; native dtype kept (no f32 HBM copy)
    t = jnp.ravel(target)

    rem = n % LANES
    n_aligned = n - rem

    # Ragged tail (<128 elements): tiny plain-JAX reduction outside the kernel
    # (avoids a full-array jnp.pad copy).  The prefix slice below only happens
    # when rem != 0; for typical NCHW inputs n % 128 == 0 and no copy occurs.
    if rem:
        p_tail = p[n_aligned:].astype(jnp.float32)
        t_tail = t[n_aligned:].astype(jnp.float32)
        tail_valid = (t_tail > 0.0).astype(jnp.float32)
        tail_sum = jnp.sum(jnp.abs(t_tail - p_tail) * tail_valid)
        tail_cnt = jnp.sum(tail_valid)
        p = p[:n_aligned]
        t = t[:n_aligned]
    else:
        tail_sum = jnp.float32(0.0)
        tail_cnt = jnp.float32(0.0)

    rows = n_aligned // LANES
    if rows == 0:
        # Entire input fit in the tail.
        return (tail_sum / tail_cnt).astype(jnp.float32)

    p2 = p.reshape(rows, LANES)
    t2 = t.reshape(rows, LANES)

    gen = _tpu_generation()
    itemsize = max(jnp.dtype(pred.dtype).itemsize, jnp.dtype(target.dtype).itemsize)
    if max_tile_rows is None:
        # Per-input per-buffer tile byte budget: 4 MiB on v6e/v7x, 2 MiB on
        # v5e/unknown.  2 inputs x 2 pipeline buffers => 16 / 8 MiB of VMEM,
        # safely under the default scoped VMEM on every generation.
        budget = (4 << 20) if gen in ("v6e", "v7x") else (2 << 20)
        max_tile_rows = max(8, budget // (LANES * itemsize))
    if num_chunks is None:
        # Two independent chunks only on two-TensorCore chips (v7x); on a
        # single TC the split is just a serial loop split with a wasted
        # duplicate DMA when num_tiles is odd.
        num_chunks = 2 if gen == "v7x" else 1

    sub = max(_sublane_multiple(pred.dtype), _sublane_multiple(target.dtype), 8)
    tile_rows = min(max_tile_rows, _round_up(rows, sub))
    tile_rows = _round_up(tile_rows, sub)
    num_tiles = _cdiv(rows, tile_rows)
    num_chunks = num_chunks if num_tiles >= num_chunks else 1
    steps = _cdiv(num_tiles, num_chunks)
    last_block = num_tiles - 1

    # Largest accumulator height (multiple of 8, <= 64) that divides tile_rows.
    acc_rows = 8
    for cand in (64, 32, 16):
        if tile_rows % cand == 0:
            acc_rows = cand
            break

    def in_index_map(c, i):
        # Clamp so the auto-generated DMA never targets a fully out-of-bounds
        # block; duplicated blocks are masked to zero in-kernel.
        return (jnp.minimum(c * steps + i, last_block), 0)

    kernel = functools.partial(
        _masked_l1_kernel, rows_total=rows, steps=steps,
        tile_rows=tile_rows, acc_rows=acc_rows)

    sums, cnts = pl.pallas_call(
        kernel,
        out_shape=(
            jax.ShapeDtypeStruct((num_chunks, 1), jnp.float32),
            jax.ShapeDtypeStruct((num_chunks, 1), jnp.float32),
        ),
        grid=(num_chunks, steps),
        in_specs=[
            pl.BlockSpec((tile_rows, LANES), in_index_map),
            pl.BlockSpec((tile_rows, LANES), in_index_map),
        ],
        out_specs=(
            pl.BlockSpec((1, 1), lambda c, i: (c, 0), memory_space=pltpu.SMEM),
            pl.BlockSpec((1, 1), lambda c, i: (c, 0), memory_space=pltpu.SMEM),
        ),
        scratch_shapes=[
            pltpu.VMEM((acc_rows, LANES), jnp.float32),
            pltpu.VMEM((acc_rows, LANES), jnp.float32),
        ],
        compiler_params=pltpu.CompilerParams(
            dimension_semantics=("parallel", "arbitrary"),
        ),
    )(p2, t2)

    total_sum = jnp.sum(sums) + tail_sum
    total_cnt = jnp.sum(cnts) + tail_cnt
    # NaN when there is no valid pixel, matching torch .mean() on an empty selection.
    return (total_sum / total_cnt).astype(jnp.float32)


def masked_l1_loss_ref(pred, target):
    mask = target > 0
    diff = jnp.abs(target.astype(jnp.float32) - pred.astype(jnp.float32))
    return jnp.sum(jnp.where(mask, diff, 0.0)) / jnp.sum(mask.astype(jnp.float32))


def _make_inputs(key, shape):
    k1, k2 = jax.random.split(key)
    pred = jax.random.normal(k1, shape, dtype=jnp.float32)
    raw = jax.random.uniform(k2, shape, dtype=jnp.float32, minval=-1.0, maxval=5.0)
    target = jnp.where(raw > 0.5, raw, 0.0)   # mix of valid depths and zeros
    return pred, target


if __name__ == "__main__":
    key = jax.random.PRNGKey(0)
    keys = jax.random.split(key, 4)

    # Primary small NCHW test (module-sized input), single interior block.
    pred, target = _make_inputs(keys[0], (2, 4, 16, 16))
    loss = jax.block_until_ready(masked_l1_loss(pred, target))
    ref = masked_l1_loss_ref(pred, target)
    assert jnp.allclose(loss, ref, rtol=1e-5, atol=1e-6), (loss, ref)

    # Multi-tile sequential reduction (small tile override), interior fast path.
    pred2, target2 = _make_inputs(keys[1], (2, 4, 64, 64))
    loss2 = jax.block_until_ready(masked_l1_loss(pred2, target2, max_tile_rows=64))
    ref2 = masked_l1_loss_ref(pred2, target2)
    assert jnp.allclose(loss2, ref2, rtol=1e-5, atol=1e-6), (loss2, ref2)

    # Two chunks + odd tile count (clamped duplicate block) + partial last block.
    pred3, target3 = _make_inputs(keys[2], (1, 1, 250, 128))
    loss3 = jax.block_until_ready(
        masked_l1_loss(pred3, target3, max_tile_rows=64, num_chunks=2))
    ref3 = masked_l1_loss_ref(pred3, target3)
    assert jnp.allclose(loss3, ref3, rtol=1e-5, atol=1e-6), (loss3, ref3)

    # Ragged input (element count not a multiple of 128): plain-JAX tail path.
    pred4, target4 = _make_inputs(keys[3], (3, 3, 17, 13))
    loss4 = jax.block_until_ready(masked_l1_loss(pred4, target4))
    ref4 = masked_l1_loss_ref(pred4, target4)
    assert jnp.allclose(loss4, ref4, rtol=1e-5, atol=1e-6), (loss4, ref4)

    print("KERNEL_OK")
</pallas_src>

<mosaic_0001>
module attributes {stable_mosaic.version = 11 : i64} {
  func.func @_masked_l1_kernel(%arg0: i32, %arg1: i32, %arg2: memref<16x128xf32, #tpu.memory_space<vmem>>, %arg3: memref<16x128xf32, #tpu.memory_space<vmem>>, %arg4: memref<1x1xf32, #tpu.memory_space<smem>>, %arg5: memref<1x1xf32, #tpu.memory_space<smem>>, %arg6: memref<16x128xf32, #tpu.memory_space<vmem>>, %arg7: memref<16x128xf32, #tpu.memory_space<vmem>>) attributes {dimension_semantics = [#tpu.dimension_semantics<parallel>, #tpu.dimension_semantics<arbitrary>], iteration_bounds = array<i64: 1, 1>, scalar_prefetch = 0 : i64, scratch_operands = 2 : i64, tpu.core_type = #tpu.core_type<tc>, window_params = [{transform_indices = @transform_0, window_bounds = array<i64: 16, 128>}, {transform_indices = @transform_1, window_bounds = array<i64: 16, 128>}, {transform_indices = @transform_2, window_bounds = array<i64: 1, 1>}, {transform_indices = @transform_3, window_bounds = array<i64: 1, 1>}]} {
    %c0_i32 = arith.constant 0 : i32
    %0 = arith.cmpi eq, %arg1, %c0_i32 : i32
    %1 = arith.extui %0 : i1 to i32
    %c0_i32_0 = arith.constant 0 : i32
    %2 = arith.cmpi ne, %1, %c0_i32_0 : i32
    scf.if %2 {
      %cst = arith.constant 0.000000e+00 : f32
      %18 = vector.broadcast %cst : f32 to vector<16x128xf32>
      %c0_10 = arith.constant 0 : index
      %c0_11 = arith.constant 0 : index
      %19 = vector.load %arg6[%c0_10, %c0_11] : memref<16x128xf32, #tpu.memory_space<vmem>>, vector<16x128xf32>
      tpu.vector_store %arg6[%c0_10, %c0_11], %18 {strides = array<i32>} : memref<16x128xf32, #tpu.memory_space<vmem>>, vector<16x128xf32>,
      %cst_12 = arith.constant 0.000000e+00 : f32
      %20 = vector.broadcast %cst_12 : f32 to vector<16x128xf32>
      %c0_13 = arith.constant 0 : index
      %c0_14 = arith.constant 0 : index
      %21 = vector.load %arg7[%c0_13, %c0_14] : memref<16x128xf32, #tpu.memory_space<vmem>>, vector<16x128xf32>
      tpu.vector_store %arg7[%c0_13, %c0_14], %20 {strides = array<i32>} : memref<16x128xf32, #tpu.memory_space<vmem>>, vector<16x128xf32>,
    } else {
    }
    %c0 = arith.constant 0 : index
    %c0_1 = arith.constant 0 : index
    %3 = vector.load %arg3[%c0, %c0_1] : memref<16x128xf32, #tpu.memory_space<vmem>>, vector<16x128xf32>
    %c0_2 = arith.constant 0 : index
    %c0_3 = arith.constant 0 : index
    %4 = vector.load %arg2[%c0_2, %c0_3] : memref<16x128xf32, #tpu.memory_space<vmem>>, vector<16x128xf32>
    %c1_i32 = arith.constant 1 : i32
    %5 = arith.muli %arg0, %c1_i32 : i32
    %6 = arith.addi %5, %arg1 : i32
    %c1_i32_4 = arith.constant 1 : i32
    %7 = arith.addi %6, %c1_i32_4 : i32
    %c16_i32 = arith.constant 16 : i32
    %8 = arith.muli %7, %c16_i32 : i32
    %c16_i32_5 = arith.constant 16 : i32
    %9 = arith.cmpi sle, %8, %c16_i32_5 : i32
    %10 = arith.extui %9 : i1 to i32
    %c0_i32_6 = arith.constant 0 : i32
    %11 = arith.cmpi ne, %10, %c0_i32_6 : i32
    scf.if %11 {
      %cst = arith.constant 0.000000e+00 : f32
      %18 = vector.broadcast %cst : f32 to vector<16x128xf32>
      %19 = arith.cmpf ogt, %3, %18 : vector<16x128xf32>
      %20 = arith.extui %19 : vector<16x128xi1> to vector<16x128xi32>
      %21 = arith.sitofp %20 : vector<16x128xi32> to vector<16x128xf32>
      %22 = arith.subf %3, %4 : vector<16x128xf32>
      %23 = math.absf %22 : vector<16x128xf32>
      %24 = arith.mulf %23, %21 : vector<16x128xf32>
      %c0_10 = arith.constant 0 : index
      %c0_11 = arith.constant 0 : index
      %25 = vector.load %arg6[%c0_10, %c0_11] : memref<16x128xf32, #tpu.memory_space<vmem>>, vector<16x128xf32>
      %26 = vector.shape_cast %24 : vector<16x128xf32> to vector<1x16x128xf32>
      %cst_12 = arith.constant dense<0.000000e+00> : vector<16x128xf32>
      %27 = vector.multi_reduction <add>, %26, %cst_12 [0] : vector<1x16x128xf32> to vector<16x128xf32>
      %28 = arith.addf %25, %27 : vector<16x128xf32>
      %c0_13 = arith.constant 0 : index
      %c0_14 = arith.constant 0 : index
      %29 = vector.load %arg6[%c0_13, %c0_14] : memref<16x128xf32, #tpu.memory_space<vmem>>, vector<16x128xf32>
      tpu.vector_store %arg6[%c0_13, %c0_14], %28 {strides = array<i32>} : memref<16x128xf32, #tpu.memory_space<vmem>>, vector<16x128xf32>,
      %c0_15 = arith.constant 0 : index
      %c0_16 = arith.constant 0 : index
      %30 = vector.load %arg7[%c0_15, %c0_16] : memref<16x128xf32, #tpu.memory_space<vmem>>, vector<16x128xf32>
      %31 = vector.shape_cast %21 : vector<16x128xf32> to vector<1x16x128xf32>
      %cst_17 = arith.constant dense<0.000000e+00> : vector<16x128xf32>
      %32 = vector.multi_reduction <add>, %31, %cst_17 [0] : vector<1x16x128xf32> to vector<16x128xf32>
      %33 = arith.addf %30, %32 : vector<16x128xf32>
      %c0_18 = arith.constant 0 : index
      %c0_19 = arith.constant 0 : index
      %34 = vector.load %arg7[%c0_18, %c0_19] : memref<16x128xf32, #tpu.memory_space<vmem>>, vector<16x128xf32>
      tpu.vector_store %arg7[%c0_18, %c0_19], %33 {strides = array<i32>} : memref<16x128xf32, #tpu.memory_space<vmem>>, vector<16x128xf32>,
    } else {
    }
    %true = arith.constant true
    %12 = arith.xori %9, %true : i1
    %13 = arith.extui %12 : i1 to i32
    %c0_i32_7 = arith.constant 0 : i32
    %14 = arith.cmpi ne, %13, %c0_i32_7 : i32
    scf.if %14 {
      %c16_i32_10 = arith.constant 16 : i32
      %18 = arith.muli %6, %c16_i32_10 : i32
      %c16_i32_11 = arith.constant 16 : i32
      %19 = arith.subi %c16_i32_11, %18 : i32
      %20 = tpu.iota {dimensions = array<i32: 0>} : vector<16x128xi32>
      %cst = arith.constant 0.000000e+00 : f32
      %21 = vector.broadcast %cst : f32 to vector<16x128xf32>
      %22 = arith.cmpf ogt, %3, %21 : vector<16x128xf32>
      %23 = vector.broadcast %19 : i32 to vector<16x128xi32>
      %24 = arith.cmpi slt, %20, %23 : vector<16x128xi32>
      %25 = arith.andi %22, %24 : vector<16x128xi1>
      %26 = arith.extui %25 : vector<16x128xi1> to vector<16x128xi32>
      %27 = arith.sitofp %26 : vector<16x128xi32> to vector<16x128xf32>
      %28 = arith.subf %3, %4 : vector<16x128xf32>
      %29 = math.absf %28 : vector<16x128xf32>
      %30 = arith.mulf %29, %27 : vector<16x128xf32>
      %c0_12 = arith.constant 0 : index
      %c0_13 = arith.constant 0 : index
      %31 = vector.load %arg6[%c0_12, %c0_13] : memref<16x128xf32, #tpu.memory_space<vmem>>, vector<16x128xf32>
      %32 = vector.shape_cast %30 : vector<16x128xf32> to vector<1x16x128xf32>
      %cst_14 = arith.constant dense<0.000000e+00> : vector<16x128xf32>
      %33 = vector.multi_reduction <add>, %32, %cst_14 [0] : vector<1x16x128xf32> to vector<16x128xf32>
      %34 = arith.addf %31, %33 : vector<16x128xf32>
      %c0_15 = arith.constant 0 : index
      %c0_16 = arith.constant 0 : index
      %35 = vector.load %arg6[%c0_15, %c0_16] : memref<16x128xf32, #tpu.memory_space<vmem>>, vector<16x128xf32>
      tpu.vector_store %arg6[%c0_15, %c0_16], %34 {strides = array<i32>} : memref<16x128xf32, #tpu.memory_space<vmem>>, vector<16x128xf32>,
      %c0_17 = arith.constant 0 : index
      %c0_18 = arith.constant 0 : index
      %36 = vector.load %arg7[%c0_17, %c0_18] : memref<16x128xf32, #tpu.memory_space<vmem>>, vector<16x128xf32>
      %37 = vector.shape_cast %27 : vector<16x128xf32> to vector<1x16x128xf32>
      %cst_19 = arith.constant dense<0.000000e+00> : vector<16x128xf32>
      %38 = vector.multi_reduction <add>, %37, %cst_19 [0] : vector<1x16x128xf32> to vector<16x128xf32>
      %39 = arith.addf %36, %38 : vector<16x128xf32>
      %c0_20 = arith.constant 0 : index
      %c0_21 = arith.constant 0 : index
      %40 = vector.load %arg7[%c0_20, %c0_21] : memref<16x128xf32, #tpu.memory_space<vmem>>, vector<16x128xf32>
      tpu.vector_store %arg7[%c0_20, %c0_21], %39 {strides = array<i32>} : memref<16x128xf32, #tpu.memory_space<vmem>>, vector<16x128xf32>,
    } else {
    }
    %c0_i32_8 = arith.constant 0 : i32
    %15 = arith.cmpi eq, %arg1, %c0_i32_8 : i32
    %16 = arith.extui %15 : i1 to i32
    %c0_i32_9 = arith.constant 0 : i32
    %17 = arith.cmpi ne, %16, %c0_i32_9 : i32
    scf.if %17 {
      %c0_10 = arith.constant 0 : index
      %c0_11 = arith.constant 0 : index
      %18 = vector.load %arg6[%c0_10, %c0_11] : memref<16x128xf32, #tpu.memory_space<vmem>>, vector<16x128xf32>
      %19 = vector.shape_cast %18 : vector<16x128xf32> to vector<1x16x128xf32>
      %cst = arith.constant dense<0.000000e+00> : vector<1xf32>
      %20 = vector.multi_reduction <add>, %19, %cst [1, 2] : vector<1x16x128xf32> to vector<1xf32>
      %21 = vector.shape_cast %20 : vector<1xf32> to vector<1x1x1xf32>
      %22 = vector.extract %21[0, 0, 0] : f32 from vector<1x1x1xf32>
      %c0_12 = arith.constant 0 : index
      %c0_13 = arith.constant 0 : index
      %23 = memref.load %arg4[%c0_12, %c0_13] : memref<1x1xf32, #tpu.memory_space<smem>>
      memref.store %22, %arg4[%c0_12, %c0_13] : memref<1x1xf32, #tpu.memory_space<smem>>
      %c0_14 = arith.constant 0 : index
      %c0_15 = arith.constant 0 : index
      %24 = vector.load %arg7[%c0_14, %c0_15] : memref<16x128xf32, #tpu.memory_space<vmem>>, vector<16x128xf32>
      %25 = vector.shape_cast %24 : vector<16x128xf32> to vector<1x16x128xf32>
      %cst_16 = arith.constant dense<0.000000e+00> : vector<1xf32>
      %26 = vector.multi_reduction <add>, %25, %cst_16 [1, 2] : vector<1x16x128xf32> to vector<1xf32>
      %27 = vector.shape_cast %26 : vector<1xf32> to vector<1x1x1xf32>
      %28 = vector.extract %27[0, 0, 0] : f32 from vector<1x1x1xf32>
      %c0_17 = arith.constant 0 : index
      %c0_18 = arith.constant 0 : index
      %29 = memref.load %arg5[%c0_17, %c0_18] : memref<1x1xf32, #tpu.memory_space<smem>>
      memref.store %28, %arg5[%c0_17, %c0_18] : memref<1x1xf32, #tpu.memory_space<smem>>
    } else {
    }
    return
  }
  func.func @transform_0(%arg0: i32, %arg1: i32) -> (i32, i32) {
    %c1_i32 = arith.constant 1 : i32
    %0 = arith.muli %arg0, %c1_i32 : i32
    %1 = arith.addi %0, %arg1 : i32
    %c0_i32 = arith.constant 0 : i32
    %2 = arith.minsi %1, %c0_i32 : i32
    %c0_i32_0 = arith.constant 0 : i32
    %c0_i32_1 = arith.constant 0 : i32
    return %2, %c0_i32_0 : i32, i32
  }
  func.func @transform_1(%arg0: i32, %arg1: i32) -> (i32, i32) {
    %c1_i32 = arith.constant 1 : i32
    %0 = arith.muli %arg0, %c1_i32 : i32
    %1 = arith.addi %0, %arg1 : i32
    %c0_i32 = arith.constant 0 : i32
    %2 = arith.minsi %1, %c0_i32 : i32
    %c0_i32_0 = arith.constant 0 : i32
    %c0_i32_1 = arith.constant 0 : i32
    return %2, %c0_i32_0 : i32, i32
  }
  func.func @transform_2(%arg0: i32, %arg1: i32) -> (i32, i32) {
    %c0_i32 = arith.constant 0 : i32
    %c0_i32_0 = arith.constant 0 : i32
    return %arg0, %c0_i32 : i32, i32
  }
  func.func @transform_3(%arg0: i32, %arg1: i32) -> (i32, i32) {
    %c0_i32 = arith.constant 0 : i32
    %c0_i32_0 = arith.constant 0 : i32
    return %arg0, %c0_i32 : i32, i32
  }
}

</mosaic_0001>

<bundles_post_ra>
// kernel: tpu_custom_call.1
= control target key start
LH: loop header
LB: loop body
LE: loop exit
PB: predicated region body
PF: predicated region fallthrough
CT: control target
= control target key end

     0   :  { %9 = vsyncpa [#allocation5], 0  ;;  %s332_s0 = inlined_call_operand.hbm [shape: f32[16,128], index: 0, kind: input, shape index: {}]   ;;  %s333_s1 = inlined_call_operand.hbm [shape: f32[16,128], index: 1, kind: input, shape index: {}]   ;;  %s334_s2 = inlined_call_operand.hbm [shape: f32[1,1], index: 2, kind: output, shape index: {0}]   ;;  %s335_s3 = inlined_call_operand.hbm [shape: f32[1,1], index: 3, kind: output, shape index: {1}]  }
   0x1   :  { %10 = vsyncpa [#allocation8], 0 }
   0x2   :  { %11 = vsyncpa [#allocation6], 0 }
   0x3   :  { %12 = vsyncpa [#allocation11], 0  ;;  %s293_s12 = smov [#allocation4]  }
   0x4   :  { %s24_s13 = sshll.u32 %s293_s12, 4  ;;  %s25_s13 = int_to_ptr.vmem [resolvable:$true] %s24_s13 }
   0x5   :  { %s237_s14 = scalar_lea.vmem %s25_s13, 256  ;;  %p242_p1 = scmp.lt.s32.totalorder %s25_s13, %s25_s13 }
   0x6   :  { %p238_p0 = scmp.ne.s32.totalorder %s25_s13, %s237_s14  ;;  %p243_p2 = scmp.lt.s32.totalorder %s237_s14, %s237_s14 }
   0x8   :  { %p244_p3 = por %p243_p2, %p242_p1 }
   0xa   :  { %p245_p4 = pnand %p244_p3, %p238_p0 }
   0xc   :  { %248 = shalt.err (!%p245_p4)
}
   0xd   :  { %s294_s15 = smov 128   ;;  %s295_s16 = smov 8  }
   0xe   :  { %30 = dma.hbm_to_vmem [thread:$0]  %s332_s0, 256, %s25_s13, [#allocation5], %s294_s15, %s294_s15, %s295_s16  }
   0xf   :  { %s296_s19 = smov [#allocation7]  }
  0x10   :  { %s42_s20 = sshll.u32 %s296_s19, 4  ;;  %s43_s20 = int_to_ptr.vmem [resolvable:$true] %s42_s20 }
  0x11   :  { %s257_s21 = scalar_lea.vmem %s43_s20, 256  ;;  %p262_p6 = scmp.lt.s32.totalorder %s43_s20, %s43_s20 }
  0x12   :  { %p258_p5 = scmp.ne.s32.totalorder %s43_s20, %s257_s21  ;;  %p263_p7 = scmp.lt.s32.totalorder %s257_s21, %s257_s21 }
  0x14   :  { %p264_p8 = por %p263_p7, %p262_p6 }
  0x16   :  { %p265_p9 = pnand %p264_p8, %p258_p5 }
  0x18   :  { %268 = shalt.err (!%p265_p9)
}
  0x19   :  { %48 = dma.hbm_to_vmem [thread:$0]  %s333_s1, 256, %s43_s20, [#allocation8], %s294_s15, %s294_s15, %s295_s16  }
  0x1a   :  { %285 = dma.done.wait [#allocation5], 256  }
  0x1b   :  { %286 = vsyncadd [#allocation5], 4294967040 }
  0x1c   :  { %287 = dma.done.wait [#allocation8], 256  }
  0x1d   :  { %288 = vsyncadd [#allocation8], 4294967040  ;;  %v71_v0 = vld [vmem:[#allocation7] sm:$0xff]  ;;  %v72_v1 = vld [vmem:[#allocation7 + $0x8] sm:$0xff]  ;;  %v297_v5 = vmov 0.0   ;;  %s298_s1 = smov [#allocation9]  }
  0x1e   :  { %v73_v2 = vld [vmem:[#allocation4] sm:$0xff]  ;;  %v74_v3 = vld [vmem:[#allocation4 + $0x8] sm:$0xff]  ;;  %vm82_vm0 = vcmp.gt.f32.partialorder %v71_v0, 0.0  ;;  %vm83_vm1 = vcmp.gt.f32.partialorder %v72_v1, 0.0  ;;  %s299_s27 = smov [#allocation10]  }
  0x1f   :  { %v88_v4 = vsub.f32 %v71_v0, %v73_v2  ;;  %v214_v6 = vsel %vm82_vm0, 1.0, %v297_v5  ;;  %v89_v7 = vsub.f32 %v72_v1, %v74_v3  ;;  %v215_v8 = vsel %vm83_vm1, 1.0, %v297_v5 }
  0x20   :  { %v171_v14 = vadd.f32 %v215_v8, %v214_v6 }
  0x21   :  { %v90_v9 = vand.u32 2147483647, %v88_v4  ;;  %v91_v10 = vand.u32 2147483647, %v89_v7 }
  0x23   :  { %v92_v11 = vmul.f32 %v214_v6, %v90_v9  ;;  %v93_v12 = vmul.f32 %v215_v8, %v91_v10 }
  0x25   :  { %v157_v13 = vadd.f32 %v93_v12, %v92_v11 }
  0x27   :  { %158 = vadd.xlane.f32.xlu0 %v157_v13 }
  0x2b   :  { %172 = vadd.xlane.f32.xlu0 %v171_v14 }
  0xb0   :  { %v159_v15 = vpop.xlane.xlu0 %158 }
  0xb1   :  { %v160_v16 = vrot.slane %v159_v15, 4 }
  0xb3   :  { %v161_v17 = vadd.f32 %v160_v16, %v159_v15 }
  0xb4   :  { %v173_v18 = vpop.xlane.xlu0 %172 }
  0xb5   :  { %v162_v19 = vrot.slane %v161_v17, 2  ;;  %v174_v20 = vrot.slane %v173_v18, 4 }
  0xb7   :  { %v175_v21 = vadd.f32 %v174_v20, %v173_v18  ;;  %v163_v22 = vadd.f32 %v162_v19, %v161_v17 }
  0xb9   :  { %v176_v23 = vrot.slane %v175_v21, 2  ;;  %v164_v24 = vrot.slane %v163_v22, 1 }
  0xbb   :  { %v177_v25 = vadd.f32 %v176_v23, %v175_v21  ;;  %v165_v26 = vadd.f32 %v164_v24, %v163_v22 }
  0xbd   :  { %218 = vpush %v165_v26  ;;  %v178_v27 = vrot.slane %v177_v25, 1 }
  0xbf   :  { %v179_v28 = vadd.f32 %v178_v27, %v177_v25 }
  0xc1   :  { %220 = vpush %v179_v28 }
  0xee   :  { %s219_s0 = spop %218 }
  0xef   :  { %168 = sst [smem:[#allocation9]] %s219_s0 }
  0xf0   :  { %190 = dma.smem_to_hbm %s298_s1, 16, %s334_s2, [#allocation6]  }
  0xf2   :  { %s221_s26 = spop %220 }
  0xf3   :  { %182 = sst [smem:[#allocation10]] %s221_s26 }
  0xf4   :  { %198 = dma.smem_to_hbm %s299_s27, 16, %s335_s3, [#allocation11]  }
  0xf5   :  { %289 = dma.done.wait [#allocation6], 16  }
  0xf6   :  { %290 = vsyncadd [#allocation6], 4294967280 }
  0xf7   :  { %291 = dma.done.wait [#allocation11], 16  }
  0xf8   :  { %292 = vsyncadd [#allocation11], 4294967280 }
  0xf9   :  { %205 = sfence }
  0xfa   :  { %206 = vsyncpa [#allocation5], 1 }
  0xfb   :  { %207 = vsyncpa [#allocation8], 1 }
  0xfc   :  { %208 = vsyncpa [#allocation6], 1 }
  0xfd   :  { %209 = vsyncpa [#allocation11], 1 }

</bundles_post_ra>
